<compile_context>
chip_gen: v7x
topology: tpu7x:2x2x1
jax: 0.10.0
libtpu: 0.0.40
codegen_flags: <defaults>
</compile_context>

<pallas_src>
import functools

import jax
import jax.numpy as jnp
from jax.experimental import pallas as pl
from jax.experimental.pallas import tpu as pltpu


def _round_up(a, b):
    return (a + b - 1) // b * b


def _sublane_align(dtype):
    itemsize = jnp.dtype(dtype).itemsize
    return {4: 8, 2: 16, 1: 32}.get(itemsize, 8)


def _choose_vocab_tile(V, tn_req):
    """Vocab tile: multiple of 128 and, when possible, an exact divisor of V so the
    weight matrix never needs a per-call pad/copy."""
    tn_req = max(128, (tn_req // 128) * 128)
    if V % 128 == 0:
        tn = min(tn_req, V)
        while tn >= 128:
            if V % tn == 0:
                return tn, V           # no padding needed
            tn -= 128
    tn = min(tn_req, _round_up(V, 128))
    return tn, _round_up(V, tn)


def _default_vmem_limit_bytes():
    # ~85% of physical per-core VMEM (leave compiler scratch headroom):
    #   v5e/v6e: 128 MiB -> ~108 MiB,  v7x: 64 MiB -> ~54 MiB.
    try:
        return int(pltpu.get_tpu_info().vmem_capacity_bytes * 0.85)
    except Exception:
        return None                    # let the compiler use its default budget


# ------------------------------------------------------------------ pass 1 ----
def _logits_lse_kernel(x_ref, w_ref, b_ref, logits_ref, lse_ref, m_sc, l_sc):
    j = pl.program_id(1)

    @pl.when(j == 0)
    def _():
        m_sc[...] = jnp.full(m_sc.shape, -jnp.inf, dtype=m_sc.dtype)
        l_sc[...] = jnp.zeros(l_sc.shape, dtype=l_sc.dtype)

    # logits tile = x_i @ W_j + b_j  (bf16/f32 MXU inputs, f32 accumulation).
    logits = jnp.dot(x_ref[...], w_ref[...],
                     preferred_element_type=jnp.float32) + b_ref[...]
    # Raw logits stored already in the FINAL output dtype; corrected in place in pass 2.
    logits_ref[...] = logits.astype(logits_ref.dtype)

    # Online logsumexp across vocab tiles (running max m, running sum l) in f32.
    m_old = m_sc[...]
    m_new = jnp.maximum(m_old, jnp.max(logits, axis=-1, keepdims=True))
    l_sc[...] = (l_sc[...] * jnp.exp(m_old - m_new)
                 + jnp.sum(jnp.exp(logits - m_new), axis=-1, keepdims=True))
    m_sc[...] = m_new

    @pl.when(j == pl.num_programs(1) - 1)
    def _():
        lse_ref[...] = m_sc[...] + jnp.log(l_sc[...])


# ------------------------------------------------------------------ pass 2 ----
def _subtract_lse_kernel(logits_ref, lse_ref, o_ref):
    o_ref[...] = (logits_ref[...].astype(jnp.float32)
                  - lse_ref[...]).astype(o_ref.dtype)


def output_generator_logprobs(x, w_t, bias, *, tm=512, tn=512, out_dtype=None,
                              vmem_limit_bytes="auto"):
    """
    x:    (B, S, D)  activations (f32 or bf16; fed to the MXU as-is, f32 accumulation)
    w_t:  (D, V)     PRE-transposed Linear weight (transpose/cast ONCE at load time)
    bias: (V,)
    returns (B, S, V) = log_softmax(x @ w_t + bias, axis=-1) in out_dtype (default x.dtype)

    Per-generation tile guidance (weight-reuse roofline vs VMEM budget):
      v6e: tm=1024, tn=512-1024 (raise vmem_limit_bytes toward ~100 MiB)
      v7x: tm=512,  tn=512      (64 MiB VMEM/TC; keep >=2 row blocks for megacore)
      v5e: tm=256-512, tn=512, and prefer bf16 weights/activations (lowest HBM BW).
    """
    B, S, D = x.shape
    Dw, V = w_t.shape
    assert Dw == D, "weight must be pre-transposed to (d_model, vocab)"
    out_dtype = x.dtype if out_dtype is None else out_dtype
    if vmem_limit_bytes == "auto":
        vmem_limit_bytes = _default_vmem_limit_bytes()

    N = B * S
    xf = x.reshape(N, D)
    b2 = bias.reshape(1, V).astype(jnp.float32)

    # Row tile: clamp to problem size, aligned to the dtype's sublane packing.
    row_align = _sublane_align(x.dtype)
    tm = _round_up(min(tm, _round_up(N, row_align)), row_align)
    n_pad = _round_up(N, tm)

    # Vocab tile: multiple of 128, dividing V exactly when V % 128 == 0.
    tn, v_pad = _choose_vocab_tile(V, tn)

    if n_pad != N:
        xf = jnp.pad(xf, ((0, n_pad - N), (0, 0)))       # zero rows: harmless, sliced off
    if v_pad != V:
        # TODO(synk): for production heads, pad/transpose the weight once at load time;
        # this per-call pad copies the whole projection matrix in HBM.
        w_t = jnp.pad(w_t, ((0, 0), (0, v_pad - V)))
        # Very negative bias on padded vocab columns -> exp() underflows to exactly 0,
        # so they contribute nothing to the logsumexp.
        b2 = jnp.pad(b2, ((0, 0), (0, v_pad - V)), constant_values=-1e30)

    nr = n_pad // tm
    nv = v_pad // tn

    cp_extra = {"vmem_limit_bytes": vmem_limit_bytes} if vmem_limit_bytes else {}

    # -------- pass 1: fused matmul + online logsumexp ----------------------
    logits, lse = pl.pallas_call(
        _logits_lse_kernel,
        out_shape=(jax.ShapeDtypeStruct((n_pad, v_pad), out_dtype),
                   jax.ShapeDtypeStruct((n_pad, 1), jnp.float32)),
        grid_spec=pltpu.PrefetchScalarGridSpec(
            num_scalar_prefetch=0,
            grid=(nr, nv),
            in_specs=[
                pl.BlockSpec((tm, D), lambda i, j: (i, 0)),   # x row block
                pl.BlockSpec((D, tn), lambda i, j: (0, j)),   # weight vocab slab
                pl.BlockSpec((1, tn), lambda i, j: (0, j)),   # bias vocab slab
            ],
            out_specs=(
                pl.BlockSpec((tm, tn), lambda i, j: (i, j)),  # raw logits tile
                pl.BlockSpec((tm, 1), lambda i, j: (i, 0)),   # per-row lse (resident over j)
            ),
            scratch_shapes=[pltpu.VMEM((tm, 1), jnp.float32),   # running max m
                            pltpu.VMEM((tm, 1), jnp.float32)],  # running sum l
        ),
        compiler_params=pltpu.CompilerParams(
            dimension_semantics=("parallel", "arbitrary"), **cp_extra),
    )(xf, w_t, b2)

    # -------- pass 2: in-place log_probs = logits - lse (memory-bound) -----
    # Wider lane-dense vocab blocks: fewer per-step overheads, same total traffic.
    out_itemsize = jnp.dtype(out_dtype).itemsize
    tn2 = tn
    while (v_pad % (tn2 * 2) == 0
           and tm * (tn2 * 2) * out_itemsize <= 4 * 1024 * 1024):
        tn2 *= 2
    nv2 = v_pad // tn2

    out = pl.pallas_call(
        _subtract_lse_kernel,
        out_shape=jax.ShapeDtypeStruct((n_pad, v_pad), out_dtype),
        grid_spec=pltpu.PrefetchScalarGridSpec(
            num_scalar_prefetch=0,
            grid=(nr, nv2),
            in_specs=[
                pl.BlockSpec((tm, tn2), lambda i, j: (i, j)),
                pl.BlockSpec((tm, 1), lambda i, j: (i, 0)),
            ],
            out_specs=pl.BlockSpec((tm, tn2), lambda i, j: (i, j)),
        ),
        # Reuse the logits intermediate as the output buffer (no extra N*V HBM alloc).
        input_output_aliases={0: 0},
        compiler_params=pltpu.CompilerParams(
            dimension_semantics=("parallel", "parallel"), **cp_extra),
    )(logits, lse)

    if n_pad != N or v_pad != V:
        out = out[:N, :V]
    return out.reshape(B, S, V)


def transformer_output_generator(x, weight, bias, **kwargs):
    """Convenience wrapper taking the PyTorch-convention (V, D) weight.
    In a real model, transpose/cast the weight ONCE at load time and call
    output_generator_logprobs directly instead of transposing per call."""
    return output_generator_logprobs(x, weight.T, bias, **kwargs)


if __name__ == "__main__":
    # Small, module-consistent shapes.
    batch, seq, d_model, vocab = 2, 8, 32, 64

    key = jax.random.PRNGKey(0)
    kx, kw, kb = jax.random.split(key, 3)

    x = jax.random.normal(kx, (batch, seq, d_model), dtype=jnp.float32)

    # Deterministic init matching nn.Linear's uniform(-1/sqrt(D), 1/sqrt(D)).
    bound = 1.0 / (d_model ** 0.5)
    weight = jax.random.uniform(kw, (vocab, d_model), minval=-bound, maxval=bound,
                                dtype=jnp.float32)
    bias = jax.random.uniform(kb, (vocab,), minval=-bound, maxval=bound,
                              dtype=jnp.float32)

    # Pre-transposed weight (cached once in a real model).
    w_t = jnp.asarray(weight.T)

    ref = jax.nn.log_softmax(x @ weight.T + bias, axis=-1)

    # f32 path (jit so the aliased intermediate stays an internal buffer).
    fwd_f32 = jax.jit(output_generator_logprobs)
    out = jax.block_until_ready(fwd_f32(x, w_t, bias))
    assert out.shape == (batch, seq, vocab)
    assert jnp.allclose(out, ref, atol=1e-5), "f32 mismatch vs reference"

    # bf16 activations/weights into the MXU (f32 accumulation), bf16 log-probs out.
    fwd_bf16 = jax.jit(functools.partial(output_generator_logprobs,
                                         out_dtype=jnp.bfloat16))
    out_bf16 = jax.block_until_ready(
        fwd_bf16(x.astype(jnp.bfloat16), w_t.astype(jnp.bfloat16), bias))
    assert out_bf16.shape == (batch, seq, vocab)
    assert jnp.allclose(out_bf16.astype(jnp.float32), ref, atol=0.15), \
        "bf16 mismatch vs reference"

    print("KERNEL_OK")
</pallas_src>

<mosaic_0001>
module attributes {stable_mosaic.version = 11 : i64} {
  func.func @_subtract_lse_kernel(%arg0: i32, %arg1: i32, %arg2: memref<16x128xf32, #tpu.memory_space<vmem>>, %arg3: memref<16x1xf32, #tpu.memory_space<vmem>>, %arg4: memref<16x128xf32, #tpu.memory_space<vmem>>) attributes {dimension_semantics = [#tpu.dimension_semantics<parallel>, #tpu.dimension_semantics<parallel>], iteration_bounds = array<i64: 1, 1>, scalar_prefetch = 0 : i64, scratch_operands = 0 : i64, tpu.core_type = #tpu.core_type<tc>, window_params = [{transform_indices = @transform_0, window_bounds = array<i64: 16, 128>}, {transform_indices = @transform_1, window_bounds = array<i64: 16, 1>}, {transform_indices = @transform_2, window_bounds = array<i64: 16, 128>}]} {
    %c0 = arith.constant 0 : index
    %c0_0 = arith.constant 0 : index
    %0 = vector.load %arg2[%c0, %c0_0] : memref<16x128xf32, #tpu.memory_space<vmem>>, vector<16x128xf32>
    %c0_1 = arith.constant 0 : index
    %c0_2 = arith.constant 0 : index
    %1 = vector.load %arg3[%c0_1, %c0_2] : memref<16x1xf32, #tpu.memory_space<vmem>>, vector<16x1xf32>
    %2 = vector.broadcast %1 : vector<16x1xf32> to vector<16x128xf32>
    %3 = arith.subf %0, %2 : vector<16x128xf32>
    %c0_3 = arith.constant 0 : index
    %c0_4 = arith.constant 0 : index
    %4 = vector.load %arg4[%c0_3, %c0_4] : memref<16x128xf32, #tpu.memory_space<vmem>>, vector<16x128xf32>
    tpu.vector_store %arg4[%c0_3, %c0_4], %3 {strides = array<i32>} : memref<16x128xf32, #tpu.memory_space<vmem>>, vector<16x128xf32>,
    return
  }
  func.func @transform_0(%arg0: i32, %arg1: i32) -> (i32, i32) {
    %c0_i32 = arith.constant 0 : i32
    return %arg0, %arg1 : i32, i32
  }
  func.func @transform_1(%arg0: i32, %arg1: i32) -> (i32, i32) {
    %c0_i32 = arith.constant 0 : i32
    %c0_i32_0 = arith.constant 0 : i32
    return %arg0, %c0_i32 : i32, i32
  }
  func.func @transform_2(%arg0: i32, %arg1: i32) -> (i32, i32) {
    %c0_i32 = arith.constant 0 : i32
    return %arg0, %arg1 : i32, i32
  }
}

module attributes {stable_mosaic.version = 11 : i64} {
  func.func @_logits_lse_kernel(%arg0: i32, %arg1: i32, %arg2: memref<16x32xf32, #tpu.memory_space<vmem>>, %arg3: memref<32x128xf32, #tpu.memory_space<vmem>>, %arg4: memref<1x128xf32, #tpu.memory_space<vmem>>, %arg5: memref<16x128xf32, #tpu.memory_space<vmem>>, %arg6: memref<16x1xf32, #tpu.memory_space<vmem>>, %arg7: memref<16x1xf32, #tpu.memory_space<vmem>>, %arg8: memref<16x1xf32, #tpu.memory_space<vmem>>) attributes {dimension_semantics = [#tpu.dimension_semantics<parallel>, #tpu.dimension_semantics<arbitrary>], iteration_bounds = array<i64: 1, 1>, scalar_prefetch = 0 : i64, scratch_operands = 2 : i64, tpu.core_type = #tpu.core_type<tc>, window_params = [{transform_indices = @transform_0, window_bounds = array<i64: 16, 32>}, {transform_indices = @transform_1, window_bounds = array<i64: 32, 128>}, {transform_indices = @transform_2, window_bounds = array<i64: 1, 128>}, {transform_indices = @transform_3, window_bounds = array<i64: 16, 128>}, {transform_indices = @transform_4, window_bounds = array<i64: 16, 1>}]} {
    %c0_i32 = arith.constant 0 : i32
    %0 = arith.cmpi eq, %arg1, %c0_i32 : i32
    %1 = arith.extui %0 : i1 to i32
    %c0_i32_0 = arith.constant 0 : i32
    %2 = arith.cmpi ne, %1, %c0_i32_0 : i32
    scf.if %2 {
      %cst_20 = arith.constant 0xFF800000 : f32
      %29 = vector.broadcast %cst_20 : f32 to vector<16x1xf32>
      %c0_21 = arith.constant 0 : index
      %c0_22 = arith.constant 0 : index
      %30 = vector.load %arg7[%c0_21, %c0_22] : memref<16x1xf32, #tpu.memory_space<vmem>>, vector<16x1xf32>
      tpu.vector_store %arg7[%c0_21, %c0_22], %29 {strides = array<i32>} : memref<16x1xf32, #tpu.memory_space<vmem>>, vector<16x1xf32>,
      %cst_23 = arith.constant 0.000000e+00 : f32
      %31 = vector.broadcast %cst_23 : f32 to vector<16x1xf32>
      %c0_24 = arith.constant 0 : index
      %c0_25 = arith.constant 0 : index
      %32 = vector.load %arg8[%c0_24, %c0_25] : memref<16x1xf32, #tpu.memory_space<vmem>>, vector<16x1xf32>
      tpu.vector_store %arg8[%c0_24, %c0_25], %31 {strides = array<i32>} : memref<16x1xf32, #tpu.memory_space<vmem>>, vector<16x1xf32>,
    } else {
    }
    %c0 = arith.constant 0 : index
    %c0_1 = arith.constant 0 : index
    %3 = vector.load %arg2[%c0, %c0_1] : memref<16x32xf32, #tpu.memory_space<vmem>>, vector<16x32xf32>
    %c0_2 = arith.constant 0 : index
    %c0_3 = arith.constant 0 : index
    %4 = vector.load %arg3[%c0_2, %c0_3] : memref<32x128xf32, #tpu.memory_space<vmem>>, vector<32x128xf32>
    %cst = arith.constant dense<0.000000e+00> : vector<16x128xf32>
    %5 = tpu.matmul %3, %4, %cst {dimension_numbers = #tpu.dot_dimension_numbers<[1], [0], [0], [1], [0, 0, 1, 1], [], []>} : vector<16x32xf32>, vector<32x128xf32>, vector<16x128xf32> -> vector<16x128xf32>
    %c0_4 = arith.constant 0 : index
    %c0_5 = arith.constant 0 : index
    %6 = vector.load %arg4[%c0_4, %c0_5] : memref<1x128xf32, #tpu.memory_space<vmem>>, vector<1x128xf32>
    %7 = vector.broadcast %6 : vector<1x128xf32> to vector<16x128xf32>
    %8 = arith.addf %5, %7 : vector<16x128xf32>
    %c0_6 = arith.constant 0 : index
    %c0_7 = arith.constant 0 : index
    %9 = vector.load %arg5[%c0_6, %c0_7] : memref<16x128xf32, #tpu.memory_space<vmem>>, vector<16x128xf32>
    tpu.vector_store %arg5[%c0_6, %c0_7], %8 {strides = array<i32>} : memref<16x128xf32, #tpu.memory_space<vmem>>, vector<16x128xf32>,
    %c0_8 = arith.constant 0 : index
    %c0_9 = arith.constant 0 : index
    %10 = vector.load %arg7[%c0_8, %c0_9] : memref<16x1xf32, #tpu.memory_space<vmem>>, vector<16x1xf32>
    %cst_10 = arith.constant dense<0xFF800000> : vector<16xf32>
    %11 = vector.multi_reduction <maximumf>, %8, %cst_10 [1] : vector<16x128xf32> to vector<16xf32>
    %12 = vector.shape_cast %11 : vector<16xf32> to vector<16x1xf32>
    %13 = arith.maximumf %10, %12 : vector<16x1xf32>
    %c0_11 = arith.constant 0 : index
    %c0_12 = arith.constant 0 : index
    %14 = vector.load %arg8[%c0_11, %c0_12] : memref<16x1xf32, #tpu.memory_space<vmem>>, vector<16x1xf32>
    %15 = arith.subf %10, %13 : vector<16x1xf32>
    %16 = math.exp %15 : vector<16x1xf32>
    %17 = arith.mulf %14, %16 : vector<16x1xf32>
    %18 = vector.broadcast %13 : vector<16x1xf32> to vector<16x128xf32>
    %19 = arith.subf %8, %18 : vector<16x128xf32>
    %20 = math.exp %19 : vector<16x128xf32>
    %cst_13 = arith.constant dense<0.000000e+00> : vector<16xf32>
    %21 = vector.multi_reduction <add>, %20, %cst_13 [1] : vector<16x128xf32> to vector<16xf32>
    %22 = vector.shape_cast %21 : vector<16xf32> to vector<16x1xf32>
    %23 = arith.addf %17, %22 : vector<16x1xf32>
    %c0_14 = arith.constant 0 : index
    %c0_15 = arith.constant 0 : index
    %24 = vector.load %arg8[%c0_14, %c0_15] : memref<16x1xf32, #tpu.memory_space<vmem>>, vector<16x1xf32>
    tpu.vector_store %arg8[%c0_14, %c0_15], %23 {strides = array<i32>} : memref<16x1xf32, #tpu.memory_space<vmem>>, vector<16x1xf32>,
    %c0_16 = arith.constant 0 : index
    %c0_17 = arith.constant 0 : index
    %25 = vector.load %arg7[%c0_16, %c0_17] : memref<16x1xf32, #tpu.memory_space<vmem>>, vector<16x1xf32>
    tpu.vector_store %arg7[%c0_16, %c0_17], %13 {strides = array<i32>} : memref<16x1xf32, #tpu.memory_space<vmem>>, vector<16x1xf32>,
    %c0_i32_18 = arith.constant 0 : i32
    %26 = arith.cmpi eq, %arg1, %c0_i32_18 : i32
    %27 = arith.extui %26 : i1 to i32
    %c0_i32_19 = arith.constant 0 : i32
    %28 = arith.cmpi ne, %27, %c0_i32_19 : i32
    scf.if %28 {
      %c0_20 = arith.constant 0 : index
      %c0_21 = arith.constant 0 : index
      %29 = vector.load %arg7[%c0_20, %c0_21] : memref<16x1xf32, #tpu.memory_space<vmem>>, vector<16x1xf32>
      %c0_22 = arith.constant 0 : index
      %c0_23 = arith.constant 0 : index
      %30 = vector.load %arg8[%c0_22, %c0_23] : memref<16x1xf32, #tpu.memory_space<vmem>>, vector<16x1xf32>
      %31 = math.log %30 : vector<16x1xf32>
      %32 = arith.addf %29, %31 : vector<16x1xf32>
      %c0_24 = arith.constant 0 : index
      %c0_25 = arith.constant 0 : index
      %33 = vector.load %arg6[%c0_24, %c0_25] : memref<16x1xf32, #tpu.memory_space<vmem>>, vector<16x1xf32>
      tpu.vector_store %arg6[%c0_24, %c0_25], %32 {strides = array<i32>} : memref<16x1xf32, #tpu.memory_space<vmem>>, vector<16x1xf32>,
    } else {
    }
    return
  }
  func.func @transform_0(%arg0: i32, %arg1: i32) -> (i32, i32) {
    %c0_i32 = arith.constant 0 : i32
    %c0_i32_0 = arith.constant 0 : i32
    return %arg0, %c0_i32 : i32, i32
  }
  func.func @transform_1(%arg0: i32, %arg1: i32) -> (i32, i32) {
    %c0_i32 = arith.constant 0 : i32
    %c0_i32_0 = arith.constant 0 : i32
    return %c0_i32, %arg1 : i32, i32
  }
  func.func @transform_2(%arg0: i32, %arg1: i32) -> (i32, i32) {
    %c0_i32 = arith.constant 0 : i32
    %c0_i32_0 = arith.constant 0 : i32
    return %c0_i32, %arg1 : i32, i32
  }
  func.func @transform_3(%arg0: i32, %arg1: i32) -> (i32, i32) {
    %c0_i32 = arith.constant 0 : i32
    return %arg0, %arg1 : i32, i32
  }
  func.func @transform_4(%arg0: i32, %arg1: i32) -> (i32, i32) {
    %c0_i32 = arith.constant 0 : i32
    %c0_i32_0 = arith.constant 0 : i32
    return %arg0, %c0_i32 : i32, i32
  }
}

</mosaic_0001>

<bundles_post_ra>
// kernel: output_generator_logprobs.3
= control target key start
LH: loop header
LB: loop body
LE: loop exit
PB: predicated region body
PF: predicated region fallthrough
CT: control target
= control target key end

     0   :  { %v35_v0 = vmov 0   ;;  %s69_s1 = inlined_call_operand.vmem [shape: f32[16,1], index: 1, kind: input, shape index: {}]   ;;  %s70_s0 = inlined_call_operand.vmem [shape: f32[16,128], index: 0, kind: input, shape index: {}, may-alias: {0,2}]   ;;  %s71_s2 = inlined_call_operand.vmem [shape: f32[16,128], index: 2, kind: output, shape index: {}, may-alias: {0,2}]  }
   0x1   :  { %34 = vset.pattern.permute.xlu0 %v35_v0  ;;  %v13_v1 = vld [vmem:[%s69_s1] sm:$0xff]  ;;  %v14_v2 = vld [vmem:[%s69_s1 + $0x8] sm:$0xff] }
   0x2   :  { %17 = vperm.xlu0 %34, %v13_v1   ;;  %v11_v3 = vld [vmem:[%s70_s0] sm:$0xff]  ;;  %v12_v6 = vld [vmem:[%s70_s0 + $0x8] sm:$0xff] }
   0x6   :  { %22 = vperm.xlu0 %34, %v14_v2  }
  0x81   :  { %v18_v4 = vpop.permute.xlu0 %17 }
  0x82   :  { %v25_v5 = vsub.f32 %v11_v3, %v18_v4 }
  0x84   :  { %27 = vst [vmem:[%s71_s2] sm:$0xff] %v25_v5 }
  0x85   :  { %v23_v7 = vpop.permute.xlu0 %22 }
  0x86   :  { %v26_v8 = vsub.f32 %v12_v6, %v23_v7 }
  0x88   :  { %28 = vst [vmem:[%s71_s2 + $0x8] sm:$0xff] %v26_v8 }

// kernel: output_generator_logprobs.2
= control target key start
LH: loop header
LB: loop body
LE: loop exit
PB: predicated region body
PF: predicated region fallthrough
CT: control target
= control target key end

     0   :  { %vm38_vm0 = vcmask 261120   ;;  %vm20_vm1 = vcmask 7168   ;;  %v235_v8 = vmov -inf   ;;  %v236_v14 = vmov 0   ;;  %s306_s1 = inlined_call_operand.vmem [shape: f32[32,128], index: 1, kind: input, shape index: {}]   ;;  %s307_s0 = inlined_call_operand.vmem [shape: f32[16,32], index: 0, kind: input, shape index: {}]   ;;  %s308_s2 = inlined_call_operand.vmem [shape: f32[1,128], index: 2, kind: input, shape index: {}]   ;;  %s309_s3 = inlined_call_operand.vmem [shape: f32[16,128], index: 3, kind: output, shape index: {0}]   ;;  %s310_s4 = inlined_call_operand.vmem [shape: f32[16,1], index: 4, kind: output, shape index: {1}]  }
   0x1   :  { %v27_v0 = vld [vmem:[%s306_s1] sm:$0xff]  ;;  %v28_v1 = vld [vmem:[%s306_s1 + $0x8] sm:$0xff]  ;;  %v29_v2 = vld [vmem:[%s306_s1 + $0x10] sm:$0xff]  ;;  %21 = vst.msk [vmem:[#allocation2] sm:$0xff] %vm20_vm1, %v235_v8  ;;  %221 = vset.pattern.permute.xlu1 %v236_v14  ;;  %222 = vset.pattern.permute.xlu0 %v236_v14  ;;  %v237_v15 = vmov 0.0  }
   0x2   :  { %v210_v3 = vpack.c.bf16 %v28_v1, %v27_v0  ;;  %v30_v4 = vld [vmem:[%s306_s1 + $0x18] sm:$0xff]  ;;  %v25_v5 = vld [vmem:[%s307_s0] sm:$0xff]  ;;  %v26_v7 = vld [vmem:[%s307_s0 + $0x8] sm:$0xff]  ;;  %22 = vst.msk [vmem:[#allocation2 + $0x8] sm:$0xff] %vm20_vm1, %v235_v8 }
   0x3   :  { %v214_v6 = vpack.c.bf16 %v30_v4, %v29_v2  ;;  %207 = vmatprep.mubr.msk.f32.mxu0 %vm38_vm0, %v25_v5  ;;  %v190_v9 = vld [vmem:[%s308_s2] ss:$0 sm:$0xff]  ;;  %23 = vst.msk [vmem:[#allocation3] sm:$0xff] %vm20_vm1, %v237_v15  ;;  %24 = vst.msk [vmem:[#allocation3 + $0x8] sm:$0xff] %vm20_vm1, %v237_v15 }
   0x4   :  { %211 = vmatprep.subr.bf16.mxu0 %v210_v3 }
   0x5   :  { %213 = vmatpush3.bf16.msra.mxu0 %v210_v3 }
   0x6   :  { %215 = vmatprep.subr.bf16.mxu0 %v214_v6 }
   0x8   :  { %v122_v16 = vld [vmem:[#allocation2] sm:$0xff] }
   0x9   :  { %217 = vmatpush3.bf16.msra.mxu0 %v214_v6  ;;  %v123_v19 = vld [vmem:[#allocation2 + $0x8] sm:$0xff] }
   0xa   :  { %v130_v35 = vld [vmem:[#allocation3] sm:$0xff]  ;;  %v131_v39 = vld [vmem:[#allocation3 + $0x8] sm:$0xff] }
   0xc   :  { %208 = vmatmul.mubr.msk.f32.vlgmr.msra.gmra.mrb[0].mxu0 %vm38_vm0, %v26_v7 }
  0xdf   :  { %v209_v10 = vpop.f32.mrb[0].mxu0 }
  0xe0   :  { %v117_v11 = vadd.f32 %v209_v10, %v190_v9  ;;  %v111_v12 = vpop.f32.mrb[1].mxu0 }
  0xe1   :  { %v112_v13 = vadd.f32 %v190_v9, %v111_v12 }
  0xe2   :  { %121 = vst [vmem:[%s309_s3 + $0x8] sm:$0xff] %v117_v11 }
  0xe3   :  { %120 = vst [vmem:[%s309_s3] sm:$0xff] %v112_v13  ;;  %124 = vmax.xlane.f32.xlu0 %v112_v13 }
  0xe7   :  { %126 = vmax.xlane.f32.xlu0 %v117_v11 }
 0x170   :  { %v125_v17 = vpop.xlane.xlu0 %124 }
 0x171   :  { %v128_v18 = vmax.f32 %v122_v16, %v125_v17 }
 0x173   :  { %v132_v20 = vsub.f32 %v122_v16, %v128_v18  ;;  %165 = vst.msk [vmem:[#allocation2] sm:$0xff] %vm20_vm1, %v128_v18  ;;  %142 = vperm.xlu1 %221, %v128_v18  }
 0x174   :  { %v127_v21 = vpop.xlane.xlu0 %126 }
 0x175   :  { %v129_v22 = vmax.f32 %v123_v19, %v127_v21  ;;  %v134_v32 = vmul.f32 1.442695, %v132_v20 }
 0x177   :  { %v133_v23 = vsub.f32 %v123_v19, %v129_v22  ;;  %166 = vst.msk [vmem:[#allocation2 + $0x8] sm:$0xff] %vm20_vm1, %v129_v22  ;;  %147 = vperm.xlu1 %221, %v129_v22  }
 0x179   :  { %v136_v33 = vmul.f32 1.442695, %v133_v23 }
 0x17a   :  { %v170_v48 = vld [vmem:[#allocation2] sm:$0xff] }
 0x17e   :  { %v171_v52 = vld [vmem:[#allocation2 + $0x8] sm:$0xff] }
 0x1f2   :  { %v143_v24 = vpop.permute.xlu1 %142 }
 0x1f3   :  { %v150_v25 = vsub.f32 %v112_v13, %v143_v24 }
 0x1f5   :  { %v152_v26 = vmul.f32 1.442695, %v150_v25 }
 0x1f6   :  { %v148_v27 = vpop.permute.xlu1 %147 }
 0x1f7   :  { %223 = vpow2.f32 %v152_v26  ;;  %v151_v28 = vsub.f32 %v117_v11, %v148_v27 }
 0x1f9   :  { %v154_v29 = vmul.f32 1.442695, %v151_v28 }
 0x1fb   :  { %225 = vpow2.f32 %v154_v29 }
 0x1fc   :  { %227 = vpow2.f32 %v134_v32 }
 0x1fd   :  { %229 = vpow2.f32 %v136_v33 }
 0x201   :  { %v224_v30 = vpop.eup %223 }
 0x202   :  { %156 = vadd.xlane.f32.xlu0 %v224_v30 }
 0x205   :  { %v226_v31 = vpop.eup %225 }
 0x206   :  { %158 = vadd.xlane.f32.xlu1 %v226_v31  ;;  %v228_v34 = vpop.eup %227 }
 0x207   :  { %v138_v36 = vmul.f32 %v228_v34, %v130_v35  ;;  %v230_v37 = vpop.eup %229 }
 0x208   :  { %v139_v41 = vmul.f32 %v230_v37, %v131_v39 }
 0x28f   :  { %v157_v38 = vpop.xlane.xlu0 %156 }
 0x290   :  { %v160_v40 = vadd.f32 %v157_v38, %v138_v36 }
 0x292   :  { %163 = vst.msk [vmem:[#allocation3] sm:$0xff] %vm20_vm1, %v160_v40 }
 0x293   :  { %v159_v42 = vpop.xlane.xlu1 %158 }
 0x294   :  { %v161_v43 = vadd.f32 %v159_v42, %v139_v41 }
 0x296   :  { %164 = vst.msk [vmem:[#allocation3 + $0x8] sm:$0xff] %vm20_vm1, %v161_v43 }
 0x299   :  { %v172_v44 = vld [vmem:[#allocation3] sm:$0xff] }
 0x29a   :  { %231 = vlog2.f32 %v172_v44 }
 0x29d   :  { %v173_v45 = vld [vmem:[#allocation3 + $0x8] sm:$0xff] }
 0x29e   :  { %233 = vlog2.f32 %v173_v45 }
 0x2a4   :  { %v232_v46 = vpop.eup %231 }
 0x2a5   :  { %v175_v47 = vmul.f32 0.6931472, %v232_v46 }
 0x2a7   :  { %v178_v49 = vadd.f32 %v175_v47, %v170_v48 }
 0x2a8   :  { %v234_v50 = vpop.eup %233 }
 0x2a9   :  { %180 = vst.msk [vmem:[%s310_s4] sm:$0xff] %vm20_vm1, %v178_v49  ;;  %v177_v51 = vmul.f32 0.6931472, %v234_v50 }
 0x2ab   :  { %v179_v53 = vadd.f32 %v177_v51, %v171_v52 }
 0x2ad   :  { %181 = vst.msk [vmem:[%s310_s4 + $0x8] sm:$0xff] %vm20_vm1, %v179_v53 }

</bundles_post_ra>
